<compile_context>
chip_gen: v6e
topology: v6e:2x2x1
jax: 0.10.0
libtpu: 0.0.40
codegen_flags: <defaults>
</compile_context>

<pallas_src>
import jax
import jax.numpy as jnp
import numpy as np
from jax.experimental import pallas as pl
from jax.experimental.pallas import tpu as pltpu


def _haar_w_matrix(tw):
    """(tw, tw) constant: v @ M = [adjacent-pair sums | adjacent-pair diffs]."""
    tw2 = tw // 2
    m = np.zeros((tw, tw), dtype=np.float32)
    j = np.arange(tw2)
    m[2 * j, j] = 1.0            # even-W column -> sum
    m[2 * j + 1, j] = 1.0        # odd-W  column -> sum
    m[2 * j, tw2 + j] = -1.0     # (odd - even) difference
    m[2 * j + 1, tw2 + j] = 1.0
    return jnp.asarray(m)


def _dwt_kernel(x_ref, m_ref, ll_ref, hl_ref, lh_ref, hh_ref):
    # x_ref : (TB, 2W)  each row = [even-H source row | odd-H source row]
    # m_ref : (TW, TW)  constant Haar pair-sum/pair-diff matrix (VMEM resident)
    # outs  : (TB, W2)  one per sub-band, NCHW-compatible row-major layout
    w = x_ref.shape[-1] // 2
    tw = m_ref.shape[0]
    tw2 = tw // 2

    e = x_ref[:, :w].astype(jnp.float32)   # even H rows
    o = x_ref[:, w:].astype(jnp.float32)   # odd  H rows
    s = (e + o) * 0.5                      # lanes: x1+x2 | x3+x4 (interleaved in W)
    d = (o - e) * 0.5                      # lanes: x2-x1 | x4-x3
    m = m_ref[...]

    # Static chunk loop over W (single iteration unless W is chunked to 256).
    for k in range(w // tw):
        cs = slice(k * tw, (k + 1) * tw)     # input lanes of this chunk
        co = slice(k * tw2, (k + 1) * tw2)   # output lanes of this chunk
        sm = jnp.dot(s[:, cs], m, precision=jax.lax.Precision.HIGHEST,
                     preferred_element_type=jnp.float32)   # [LL | HL]
        dm = jnp.dot(d[:, cs], m, precision=jax.lax.Precision.HIGHEST,
                     preferred_element_type=jnp.float32)   # [LH | HH]
        ll_ref[:, co] = sm[:, :tw2].astype(ll_ref.dtype)
        hl_ref[:, co] = sm[:, tw2:].astype(hl_ref.dtype)
        lh_ref[:, co] = dm[:, :tw2].astype(lh_ref.dtype)
        hh_ref[:, co] = dm[:, tw2:].astype(hh_ref.dtype)


def _pick_rows_per_block(r, w, w2, itemsize, pipeline_budget_bytes=16 << 20):
    """Rows per block, budgeting *padded* VMEM bytes (lanes->128, sublanes->8)
    for the double-buffered input + 4 output pipeline buffers."""
    pad = lambda x, m: -(-x // m) * m
    per_row = 2 * (pad(2 * w, 128) + 4 * pad(w2, 128)) * itemsize  # x2: dbl-buffered
    tb = max(1, pipeline_budget_bytes // max(per_row, 1))
    # Keep >=2 grid steps when possible so both v7x TensorCores get work.
    if r > 8:
        tb = min(tb, (r + 1) // 2)
    if tb >= r:
        return int(r)                    # single full-extent block (always legal)
    return int(max(8, (tb // 8) * 8))    # sublane-aligned; cdiv grid masks the tail


def dwt_pallas(x):
    """Level-1 Haar DWT.  x: (N, C, H, W).  Returns (LL, HL, LH, HH), each
    (N, C, H/2, W/2), matching the PyTorch dwt_init."""
    n, c, h, w = x.shape
    assert h % 2 == 0 and w % 2 == 0, "DWT requires even spatial dims"
    h2, w2 = h // 2, w // 2
    r = n * c * h2
    itemsize = jnp.dtype(x.dtype).itemsize

    # Free, contiguous reshape (no data movement): row = [even-H row | odd-H row].
    xr = x.reshape(r, 2 * w)

    # W-chunk size for the constant matrix (caps MXU flops at ~TW/4 per byte).
    tw = 256 if (w > 256 and w % 256 == 0) else w
    m = _haar_w_matrix(tw)

    tb = _pick_rows_per_block(r, w, w2, itemsize)
    grid = (pl.cdiv(r, tb),)

    out_sd = jax.ShapeDtypeStruct((r, w2), x.dtype)
    out_spec = pl.BlockSpec((tb, w2), lambda i: (i, 0))

    # NOTE: for tiny demo widths (W2 < 128) the per-sub-band stores are lane-
    # masked; fusing outputs would fix that but cost an extra HBM pass, so the
    # separate NCHW outputs (lane-dense for realistic W2 >= 128) are kept.
    ll, hl, lh, hh = pl.pallas_call(
        _dwt_kernel,
        out_shape=(out_sd, out_sd, out_sd, out_sd),
        grid=grid,
        in_specs=[
            pl.BlockSpec((tb, 2 * w), lambda i: (i, 0)),   # row blocks
            pl.BlockSpec((tw, tw), lambda i: (0, 0)),      # constant, stays resident
        ],
        out_specs=(out_spec, out_spec, out_spec, out_spec),
        compiler_params=pltpu.CompilerParams(
            dimension_semantics=("parallel",),
            vmem_limit_bytes=32 * 1024 * 1024,
        ),
    )(xr, m)

    shape4 = (n, c, h2, w2)
    return (ll.reshape(shape4), hl.reshape(shape4),
            lh.reshape(shape4), hh.reshape(shape4))


def dwt_ref(x):
    """Pure-JAX reference mirroring the PyTorch dwt_init (NCHW)."""
    x01 = x[:, :, 0::2, :] / 2
    x02 = x[:, :, 1::2, :] / 2
    x1 = x01[:, :, :, 0::2]
    x2 = x02[:, :, :, 0::2]
    x3 = x01[:, :, :, 1::2]
    x4 = x02[:, :, :, 1::2]
    return (x1 + x2 + x3 + x4,
            -x1 - x2 + x3 + x4,
            -x1 + x2 - x3 + x4,
            x1 - x2 - x3 + x4)


if __name__ == "__main__":
    key = jax.random.PRNGKey(0)
    x = jax.random.normal(key, (2, 4, 16, 16), dtype=jnp.float32)   # NCHW

    outs = jax.block_until_ready(dwt_pallas(x))
    refs = dwt_ref(x)
    for name, o, ref in zip(("LL", "HL", "LH", "HH"), outs, refs):
        assert o.shape == ref.shape and o.dtype == ref.dtype, name
        assert jnp.allclose(o, ref, atol=1e-5, rtol=1e-5), name

    print("KERNEL_OK")
</pallas_src>

<mosaic_0001>
module attributes {stable_mosaic.version = 11 : i64} {
  func.func @_dwt_kernel(%arg0: i32, %arg1: memref<32x32xf32, #tpu.memory_space<vmem>>, %arg2: memref<16x16xf32, #tpu.memory_space<vmem>>, %arg3: memref<32x8xf32, #tpu.memory_space<vmem>>, %arg4: memref<32x8xf32, #tpu.memory_space<vmem>>, %arg5: memref<32x8xf32, #tpu.memory_space<vmem>>, %arg6: memref<32x8xf32, #tpu.memory_space<vmem>>) attributes {dimension_semantics = [#tpu.dimension_semantics<parallel>], iteration_bounds = array<i64: 2>, scalar_prefetch = 0 : i64, scratch_operands = 0 : i64, tpu.core_type = #tpu.core_type<tc>, window_params = [{transform_indices = @transform_0, window_bounds = array<i64: 32, 32>}, {pipeline_mode = #tpu.pipeline_mode<synchronous>, transform_indices = @transform_1, window_bounds = array<i64: 16, 16>}, {transform_indices = @transform_2, window_bounds = array<i64: 32, 8>}, {transform_indices = @transform_3, window_bounds = array<i64: 32, 8>}, {transform_indices = @transform_4, window_bounds = array<i64: 32, 8>}, {transform_indices = @transform_5, window_bounds = array<i64: 32, 8>}]} {
    %c0 = arith.constant 0 : index
    %c0_0 = arith.constant 0 : index
    %0 = vector.load %arg1[%c0, %c0_0] : memref<32x32xf32, #tpu.memory_space<vmem>>, vector<32x16xf32>
    %c0_1 = arith.constant 0 : index
    %c16 = arith.constant 16 : index
    %1 = vector.load %arg1[%c0_1, %c16] : memref<32x32xf32, #tpu.memory_space<vmem>>, vector<32x16xf32>
    %2 = arith.addf %0, %1 : vector<32x16xf32>
    %cst = arith.constant 5.000000e-01 : f32
    %3 = vector.broadcast %cst : f32 to vector<32x16xf32>
    %4 = arith.mulf %2, %3 : vector<32x16xf32>
    %5 = arith.subf %1, %0 : vector<32x16xf32>
    %cst_2 = arith.constant 5.000000e-01 : f32
    %6 = vector.broadcast %cst_2 : f32 to vector<32x16xf32>
    %7 = arith.mulf %5, %6 : vector<32x16xf32>
    %c0_3 = arith.constant 0 : index
    %c0_4 = arith.constant 0 : index
    %8 = vector.load %arg2[%c0_3, %c0_4] : memref<16x16xf32, #tpu.memory_space<vmem>>, vector<16x16xf32>
    %cst_5 = arith.constant dense<0.000000e+00> : vector<32x16xf32>
    %9 = tpu.matmul %4, %8, %cst_5 {dimension_numbers = #tpu.dot_dimension_numbers<[1], [0], [0], [1], [0, 0, 1, 1], [], []>, precision = #tpu.contract_precision<fp32>} : vector<32x16xf32>, vector<16x16xf32>, vector<32x16xf32> -> vector<32x16xf32>
    %cst_6 = arith.constant dense<0.000000e+00> : vector<32x16xf32>
    %10 = tpu.matmul %7, %8, %cst_6 {dimension_numbers = #tpu.dot_dimension_numbers<[1], [0], [0], [1], [0, 0, 1, 1], [], []>, precision = #tpu.contract_precision<fp32>} : vector<32x16xf32>, vector<16x16xf32>, vector<32x16xf32> -> vector<32x16xf32>
    %11 = vector.extract_strided_slice %9 {offsets = [0, 0], sizes = [32, 8], strides = [1, 1]} : vector<32x16xf32> to vector<32x8xf32>
    %c0_7 = arith.constant 0 : index
    %c0_8 = arith.constant 0 : index
    %12 = vector.load %arg3[%c0_7, %c0_8] : memref<32x8xf32, #tpu.memory_space<vmem>>, vector<32x8xf32>
    tpu.vector_store %arg3[%c0_7, %c0_8], %11 {strides = array<i32>} : memref<32x8xf32, #tpu.memory_space<vmem>>, vector<32x8xf32>,
    %13 = vector.extract_strided_slice %9 {offsets = [0, 8], sizes = [32, 8], strides = [1, 1]} : vector<32x16xf32> to vector<32x8xf32>
    %c0_9 = arith.constant 0 : index
    %c0_10 = arith.constant 0 : index
    %14 = vector.load %arg4[%c0_9, %c0_10] : memref<32x8xf32, #tpu.memory_space<vmem>>, vector<32x8xf32>
    tpu.vector_store %arg4[%c0_9, %c0_10], %13 {strides = array<i32>} : memref<32x8xf32, #tpu.memory_space<vmem>>, vector<32x8xf32>,
    %15 = vector.extract_strided_slice %10 {offsets = [0, 0], sizes = [32, 8], strides = [1, 1]} : vector<32x16xf32> to vector<32x8xf32>
    %c0_11 = arith.constant 0 : index
    %c0_12 = arith.constant 0 : index
    %16 = vector.load %arg5[%c0_11, %c0_12] : memref<32x8xf32, #tpu.memory_space<vmem>>, vector<32x8xf32>
    tpu.vector_store %arg5[%c0_11, %c0_12], %15 {strides = array<i32>} : memref<32x8xf32, #tpu.memory_space<vmem>>, vector<32x8xf32>,
    %17 = vector.extract_strided_slice %10 {offsets = [0, 8], sizes = [32, 8], strides = [1, 1]} : vector<32x16xf32> to vector<32x8xf32>
    %c0_13 = arith.constant 0 : index
    %c0_14 = arith.constant 0 : index
    %18 = vector.load %arg6[%c0_13, %c0_14] : memref<32x8xf32, #tpu.memory_space<vmem>>, vector<32x8xf32>
    tpu.vector_store %arg6[%c0_13, %c0_14], %17 {strides = array<i32>} : memref<32x8xf32, #tpu.memory_space<vmem>>, vector<32x8xf32>,
    return
  }
  func.func @transform_0(%arg0: i32) -> (i32, i32) {
    %c0_i32 = arith.constant 0 : i32
    %c0_i32_0 = arith.constant 0 : i32
    return %arg0, %c0_i32 : i32, i32
  }
  func.func @transform_1(%arg0: i32) -> (i32, i32) {
    %c0_i32 = arith.constant 0 : i32
    %c0_i32_0 = arith.constant 0 : i32
    %c0_i32_1 = arith.constant 0 : i32
    return %c0_i32, %c0_i32_0 : i32, i32
  }
  func.func @transform_2(%arg0: i32) -> (i32, i32) {
    %c0_i32 = arith.constant 0 : i32
    %c0_i32_0 = arith.constant 0 : i32
    return %arg0, %c0_i32 : i32, i32
  }
  func.func @transform_3(%arg0: i32) -> (i32, i32) {
    %c0_i32 = arith.constant 0 : i32
    %c0_i32_0 = arith.constant 0 : i32
    return %arg0, %c0_i32 : i32, i32
  }
  func.func @transform_4(%arg0: i32) -> (i32, i32) {
    %c0_i32 = arith.constant 0 : i32
    %c0_i32_0 = arith.constant 0 : i32
    return %arg0, %c0_i32 : i32, i32
  }
  func.func @transform_5(%arg0: i32) -> (i32, i32) {
    %c0_i32 = arith.constant 0 : i32
    %c0_i32_0 = arith.constant 0 : i32
    return %arg0, %c0_i32 : i32, i32
  }
}

</mosaic_0001>

<bundles_post_ra>
// kernel: tpu_custom_call.1
= control target key start
LH: loop header
LB: loop body
LE: loop exit
PB: predicated region body
PF: predicated region fallthrough
CT: control target
= control target key end

     0   :  { %s1995_s18 = smov 0   ;;  %s2146_s0 = inlined_call_operand.vmem [shape: f32[64,32], index: 0, kind: input, shape index: {}]   ;;  %s2147_s1 = inlined_call_operand.vmem [shape: f32[16,16], index: 1, kind: input, shape index: {}]   ;;  %s2148_s2 = inlined_call_operand.vmem [shape: f32[64,8], index: 2, kind: output, shape index: {0}]   ;;  %s2149_s3 = inlined_call_operand.vmem [shape: f32[64,8], index: 3, kind: output, shape index: {1}]   ;;  %s2150_s4 = inlined_call_operand.vmem [shape: f32[64,8], index: 4, kind: output, shape index: {2}]   ;;  %s2151_s5 = inlined_call_operand.vmem [shape: f32[64,8], index: 5, kind: output, shape index: {3}]  }
   0x1 LB: > { %s1734_s19 = sadd.s32 4294967295, %s1960_s18   ;;  %p1738_p0 = scmp.ge.s32.totalorder %s1960_s18, 1  ;;  %s1960_s18 = sphi %s1995_s18, %s16_s18  }
   0x2   : > { %p195_p1 = scmp.lt.s32.totalorder %s1960_s18, 3 }
   0x4   : > { %p196_p2 = pnand %p1738_p0, %p195_p1 }
   0x5   : > { %s1739_s20 = sshll.u32 (!%p196_p2), %s1734_s19, 2  ;;  %s1962_s25 = smov (!%p196_p2), 16  }
   0x6   : > { %199 = sbr.rel (%p196_p2) target bundleno = 605 (0x25d), region = 28  ;;  %p239_p3 = scmp.lt.s32.totalorder (!%p196_p2), %s1739_s20, 7 }
   0x7   : > { %s1963_s30 = smov (!%p196_p2), 112   ;;  %s1964_s9 = smov (!%p196_p2), 120  }
   0xb   : > { %s2153_s20 = smov (!%p239_p3, %s1739_s20), 7  ;;  %v317_v4 = vld [vmem:[%s2147_s1 + $0x8] sm:$0xff]  ;;  %v316_v5 = vld [vmem:[%s2147_s1] sm:$0xff]  ;;  %vm318_vm0 = vcmask 130048   ;;  %vm1527_vm1 = vcmask 64512  }
   0xc   : > { %s2003_s21 = sshll.u32 %s2153_s20, 3  ;;  %v2015_v6 = vand.u32 4294901760, %v317_v4  ;;  %v2017_v7 = vand.u32 4294901760, %v316_v5 }
   0xd   : > { %s242_s24 = scalar_lea.vmem %s2146_s0, %s2003_s21  ;;  %s248_s8 = scalar_lea.vmem %s2148_s2, %s2003_s21 }
   0xe   : > { %v268_v0 = vld [vmem:[%s242_s24] sm:$0xff]  ;;  %v270_v1 = vld [vmem:[%s242_s24 + $0x10] sm:$0xff]  ;;  %v269_v2 = vld [vmem:[%s242_s24 + $0x8] sm:$0xff]  ;;  %1823 = vmatprep.subr.mxu0 %v2015_v6  ;;  %v2023_v8 = vsub.f32 %v317_v4, %v2015_v6  ;;  %v2031_v10 = vsub.f32 %v316_v5, %v2017_v7  ;;  %s260_s12 = scalar_lea.vmem %s2150_s4, %s2003_s21  ;;  %s254_s15 = scalar_lea.vmem %s2149_s3, %s2003_s21 }
   0xf   : > { %296 = vrot.lane.b32.xlu0 %v268_v0, %s1962_s25  ;;  %300 = vrot.lane.b32.xlu1 %v270_v1, %s1962_s25  ;;  %v271_v3 = vld [vmem:[%s242_s24 + $0x18] sm:$0xff]  ;;  %s266_s19 = scalar_lea.vmem %s2151_s5, %s2003_s21 }
  0x10   : > { %1824 = vmatpush3.msra.mxu0 %v2015_v6  ;;  %v2028_v9 = vand.u32 4294901760, %v2023_v8  ;;  %v2039_v12 = vand.u32 4294901760, %v2031_v10 }
  0x11   : > { %1825 = vmatprep.subr.mxu0 %v2017_v7 }
  0x12   : > { %v470_v11 = vsub.f32 %v2023_v8, %v2028_v9  ;;  %1826 = vmatpush3.msra.mxu0 %v2017_v7  ;;  %v477_v14 = vsub.f32 %v2031_v10, %v2039_v12 }
  0x13   : > { %298 = vrot.lane.b32.xlu0 %v269_v2, %s1962_s25  ;;  %302 = vrot.lane.b32.xlu1 %v271_v3, %s1962_s25 }
  0x14   : > { %1843 = vmatprep.subr.mxu0 %v2023_v8  ;;  %v2042_v13 = vand.u32 4294901760, %v470_v11  ;;  %v2047_v15 = vand.u32 4294901760, %v477_v14 }
  0x16   : > { %1833 = vmatprep.subr.mxu1 %v2042_v13 }
  0x17   : > { %276 = vrot.lane.b32.xlu0 %v268_v0, %s1963_s30  ;;  %278 = vrot.lane.b32.xlu1 %v269_v2, %s1963_s30 }
  0x18   : > { %1834 = vmatpush3.msra.mxu1 %v2042_v13 }
  0x19   : > { %1835 = vmatprep.subr.mxu1 %v2047_v15 }
  0x1a   : > { %1836 = vmatpush3.msra.mxu1 %v2047_v15 }
  0x1b   : > { %280 = vrot.lane.b32.xlu0 %v270_v1, %s1963_s30  ;;  %282 = vrot.lane.b32.xlu1 %v271_v3, %s1963_s30 }
  0x1c   : > { %1853 = vmatprep.subr.mxu1 %v2015_v6 }
  0x81   : > { %v297_v16 = vpop.permute.xlu0 %296  ;;  %v301_v17 = vpop.permute.xlu1 %300 }
  0x82   : > { %v308_v18 = vsub.f32 %v268_v0, %v297_v16  ;;  %v310_v19 = vsub.f32 %v270_v1, %v301_v17 }
  0x84   : > { %v312_v20 = vmul.f32 0.5, %v308_v18  ;;  %v314_v23 = vmul.f32 0.5, %v310_v19 }
  0x85   : > { %v299_v21 = vpop.permute.xlu0 %298  ;;  %v303_v22 = vpop.permute.xlu1 %302 }
  0x86   : > { %v309_v24 = vsub.f32 %v269_v2, %v299_v21  ;;  %923 = vrot.lane.b32.xlu0 %v312_v20, %s1963_s30  ;;  %v311_v25 = vsub.f32 %v271_v3, %v303_v22 }
  0x88   : > { %v313_v26 = vmul.f32 0.5, %v309_v24  ;;  %v315_v29 = vmul.f32 0.5, %v311_v25 }
  0x89   : > { %v277_v27 = vpop.permute.xlu0 %276  ;;  %v279_v28 = vpop.permute.xlu1 %278 }
  0x8a   : > { %927 = vrot.lane.b32.xlu0 %v314_v23, %s1963_s30  ;;  %925 = vrot.lane.b32.xlu1 %v313_v26, %s1963_s30  ;;  %v288_v30 = vadd.f32 %v277_v27, %v268_v0  ;;  %v289_v31 = vadd.f32 %v279_v28, %v269_v2 }
  0x8c   : > { %v292_v32 = vmul.f32 0.5, %v288_v30  ;;  %v293_v33 = vmul.f32 0.5, %v289_v31 }
  0x8d   : > { %v281_v34 = vpop.permute.xlu0 %280  ;;  %v283_v35 = vpop.permute.xlu1 %282 }
  0x8e   : > { %929 = vrot.lane.b32.xlu1 %v315_v29, %s1963_s30  ;;  %v320_v36 = vsel %vm318_vm0, %v292_v32, 0  ;;  %v323_v37 = vsel %vm318_vm0, %v293_v33, 0  ;;  %v290_v38 = vadd.f32 %v281_v34, %v270_v1  ;;  %v291_v39 = vadd.f32 %v283_v35, %v271_v3 }
  0x8f   : > { %v398_v40 = vand.u32 4294901760, %v320_v36  ;;  %v408_v41 = vand.u32 4294901760, %v323_v37 }
  0x90   : > { %v294_v42 = vmul.f32 0.5, %v290_v38  ;;  %v295_v43 = vmul.f32 0.5, %v291_v39 }
  0x91   : > { %v399_v44 = vsub.f32 %v320_v36, %v398_v40  ;;  %v409_v45 = vsub.f32 %v323_v37, %v408_v41  ;;  %1837 = vmatprep.mubr.f32.mxu1 %v398_v40 }
  0x92   : > { %v326_v46 = vsel %vm318_vm0, %v294_v42, 0  ;;  %v329_v47 = vsel %vm318_vm0, %v295_v43, 0  ;;  %1838 = vmatmul.mubr.f32.vlgmr.msra.gmra.mxu1 %v408_v41 }
  0x93   : > { %v418_v48 = vand.u32 4294901760, %v326_v46  ;;  %v428_v49 = vand.u32 4294901760, %v329_v47  ;;  %v400_v50 = vand.u32 4294901760, %v399_v44  ;;  %v410_v51 = vand.u32 4294901760, %v409_v45  ;;  %1854 = vmatpush3.msra.mxu1 %v2015_v6 }
  0x94   : > { %1855 = vmatprep.subr.mxu1 %v2017_v7 }
  0x95   : > { %v419_v52 = vsub.f32 %v326_v46, %v418_v48  ;;  %v429_v53 = vsub.f32 %v329_v47, %v428_v49  ;;  %v401_v54 = vsub.f32 %v399_v44, %v400_v50  ;;  %v411_v55 = vsub.f32 %v409_v45, %v410_v51  ;;  %1840 = vmatprep.mubr.f32.mxu1 %v418_v48 }
  0x96   : > { %1841 = vmatmul.mubr.f32.gmra.mxu1 %v428_v49 }
  0x97   : > { %v402_v56 = vand.u32 4294901760, %v401_v54  ;;  %v412_v57 = vand.u32 4294901760, %v411_v55  ;;  %v420_v58 = vand.u32 4294901760, %v419_v52  ;;  %v430_v59 = vand.u32 4294901760, %v429_v53  ;;  %1856 = vmatpush3.msra.mxu1 %v2017_v7  ;;  %1857 = vmatprep.mubr.f32.mxu1 %v400_v50 }
  0x98   : > { %1873 = vmatprep.subr.mxu1 %v2015_v6 }
  0x99   : > { %1827 = vmatprep.mubr.f32.mxu0 %v402_v56  ;;  %v421_v60 = vsub.f32 %v419_v52, %v420_v58  ;;  %v431_v61 = vsub.f32 %v429_v53, %v430_v59 }
  0x9a   : > { %1828 = vmatmul.mubr.f32.vlgmr.msra.gmra.mxu0 %v412_v57  ;;  %1858 = vmatmul.mubr.f32.vlgmr.msra.gmra.mxu1 %v410_v51 }
  0x9b   : > { %v422_v62 = vand.u32 4294901760, %v421_v60  ;;  %v432_v63 = vand.u32 4294901760, %v431_v61  ;;  %1844 = vmatpush3.msra.mxu0 %v2023_v8  ;;  %1860 = vmatprep.mubr.f32.mxu1 %v420_v58 }
  0x9c   : > { %1845 = vmatprep.subr.mxu0 %v2031_v10  ;;  %1874 = vmatpush3.msra.mxu1 %v2015_v6 }
  0x9d   : > { %1830 = vmatprep.mubr.f32.mxu0 %v422_v62  ;;  %1846 = vmatpush3.msra.mxu0 %v2031_v10 }
  0x9e   : > { %1831 = vmatmul.mubr.f32.gmra.mxu0 %v432_v63  ;;  %1863 = vmatprep.subr.mxu0 %v2028_v9 }
  0x9f   : > { %1847 = vmatprep.mubr.f32.mxu0 %v399_v44  ;;  %1861 = vmatmul.mubr.f32.gmra.mxu1 %v430_v59 }
  0xa0   : > { %1875 = vmatprep.subr.mxu1 %v2017_v7  ;;  %1877 = vmatprep.mubr.f32.mxu1 %v398_v40 }
  0xa1   : > { %1876 = vmatpush3.msra.mxu1 %v2017_v7 }
  0xa2   : > { %1848 = vmatmul.mubr.f32.vlgmr.msra.gmra.mxu0 %v409_v45  ;;  %1893 = vmatprep.subr.mxu1 %v2042_v13 }
  0xa3   : > { %1850 = vmatprep.mubr.f32.mxu0 %v419_v52  ;;  %1864 = vmatpush3.msra.mxu0 %v2028_v9 }
  0xa4   : > { %1865 = vmatprep.subr.mxu0 %v2039_v12  ;;  %1878 = vmatmul.mubr.f32.vlgmr.msra.gmra.mxu1 %v408_v41 }
  0xa5   : > { %1866 = vmatpush3.msra.mxu0 %v2039_v12  ;;  %1880 = vmatprep.mubr.f32.mxu1 %v418_v48 }
  0xa6   : > { %1851 = vmatmul.mubr.f32.gmra.mxu0 %v429_v53  ;;  %1894 = vmatpush3.msra.mxu1 %v2042_v13 }
  0xa7   : > { %1867 = vmatprep.mubr.f32.mxu0 %v398_v40  ;;  %1895 = vmatprep.subr.mxu1 %v2047_v15 }
  0xa8   : > { %1881 = vmatmul.mubr.f32.gmra.mxu1 %v428_v49  ;;  %1883 = vmatprep.subr.mxu0 %v2015_v6 }
  0xa9   : > { %1896 = vmatpush3.msra.mxu1 %v2047_v15 }
  0xaa   : > { %1868 = vmatmul.mubr.f32.vlgmr.msra.gmra.mxu0 %v408_v41  ;;  %1913 = vmatprep.subr.mxu1 %v2015_v6 }
  0xab   : > { %1870 = vmatprep.mubr.f32.mxu0 %v418_v48  ;;  %1884 = vmatpush3.msra.mxu0 %v2015_v6 }
  0xac   : > { %1885 = vmatprep.subr.mxu0 %v2017_v7 }
  0xad   : > { %1886 = vmatpush3.msra.mxu0 %v2017_v7 }
  0xae   : > { %1871 = vmatmul.mubr.f32.gmra.mxu0 %v428_v49  ;;  %1903 = vmatprep.subr.mxu0 %v2023_v8 }
  0xf8   : > { %v924_v0 = vpop.permute.xlu0 %923 }
  0xf9   : > { %v931_v1 = vsel %vm318_vm0, %v924_v0, 0 }
  0xfa   : > { %v1006_v2 = vand.u32 4294901760, %v931_v1 }
  0xfc   : > { %v1007_v3 = vsub.f32 %v931_v1, %v1006_v2  ;;  %v926_v4 = vpop.permute.xlu1 %925  ;;  %1897 = vmatprep.mubr.f32.mxu1 %v1006_v2  ;;  %v928_v5 = vpop.permute.xlu0 %927 }
  0xfd   : > { %v933_v11 = vsel %vm318_vm0, %v926_v4, 0  ;;  %v935_v13 = vsel %vm318_vm0, %v928_v5, 0 }
  0xfe   : > { %v1008_v14 = vand.u32 4294901760, %v1007_v3  ;;  %v1016_v15 = vand.u32 4294901760, %v933_v11  ;;  %v1026_v16 = vand.u32 4294901760, %v935_v13 }
 0x100   : > { %v1017_v17 = vsub.f32 %v933_v11, %v1016_v15  ;;  %v1027_v18 = vsub.f32 %v935_v13, %v1026_v16  ;;  %v930_v19 = vpop.permute.xlu1 %929  ;;  %1898 = vmatmul.mubr.f32.vlgmr.msra.gmra.mxu1 %v1016_v15  ;;  %v1009_v20 = vsub.f32 %v1007_v3, %v1008_v14 }
 0x101   : > { %v937_v21 = vsel %vm318_vm0, %v930_v19, 0  ;;  %1900 = vmatprep.mubr.f32.mxu1 %v1026_v16  ;;  %1914 = vmatpush3.msra.mxu1 %v2015_v6 }
 0x102   : > { %v1018_v22 = vand.u32 4294901760, %v1017_v17  ;;  %v1028_v23 = vand.u32 4294901760, %v1027_v18  ;;  %v1036_v24 = vand.u32 4294901760, %v937_v21  ;;  %v1010_v25 = vand.u32 4294901760, %v1009_v20  ;;  %1915 = vmatprep.subr.mxu1 %v2017_v7 }
 0x103   : > { %1916 = vmatpush3.msra.mxu1 %v2017_v7 }
 0x104   : > { %v1019_v26 = vsub.f32 %v1017_v17, %v1018_v22  ;;  %v1037_v27 = vsub.f32 %v937_v21, %v1036_v24  ;;  %1887 = vmatprep.mubr.f32.mxu0 %v1010_v25  ;;  %1901 = vmatmul.mubr.f32.gmra.mxu1 %v1036_v24  ;;  %v1029_v28 = vsub.f32 %v1027_v18, %v1028_v23 }
 0x105   : > { %1917 = vmatprep.mubr.f32.mxu1 %v1008_v14  ;;  %1933 = vmatprep.subr.mxu1 %v2015_v6 }
 0x106   : > { %v1020_v29 = vand.u32 4294901760, %v1019_v26  ;;  %v1038_v30 = vand.u32 4294901760, %v1037_v27  ;;  %v1030_v31 = vand.u32 4294901760, %v1029_v28 }
 0x108   : > { %1888 = vmatmul.mubr.f32.vlgmr.msra.gmra.mxu0 %v1020_v29  ;;  %1918 = vmatmul.mubr.f32.vlgmr.msra.gmra.mxu1 %v1018_v22  ;;  %v1039_v32 = vsub.f32 %v1037_v27, %v1038_v30 }
 0x109   : > { %1904 = vmatpush3.msra.mxu0 %v2023_v8  ;;  %1890 = vmatprep.mubr.f32.mxu0 %v1030_v31 }
 0x10a   : > { %1920 = vmatprep.mubr.f32.mxu1 %v1028_v23  ;;  %1905 = vmatprep.subr.mxu0 %v2031_v10  ;;  %v1040_v33 = vand.u32 4294901760, %v1039_v32 }
 0x10b   : > { %1906 = vmatpush3.msra.mxu0 %v2031_v10  ;;  %1934 = vmatpush3.msra.mxu1 %v2015_v6 }
 0x10c   : > { %1891 = vmatmul.mubr.f32.gmra.mxu0 %v1040_v33  ;;  %1921 = vmatmul.mubr.f32.gmra.mxu1 %v1038_v30 }
 0x10d   : > { %1907 = vmatprep.mubr.f32.mxu0 %v1007_v3  ;;  %1937 = vmatprep.mubr.f32.mxu1 %v1006_v2 }
 0x10e   : > { %1935 = vmatprep.subr.mxu1 %v2017_v7  ;;  %1923 = vmatprep.subr.mxu0 %v2028_v9 }
 0x10f   : > { %1936 = vmatpush3.msra.mxu1 %v2017_v7 }
 0x110   : > { %1908 = vmatmul.mubr.f32.vlgmr.msra.gmra.mxu0 %v1017_v17  ;;  %1938 = vmatmul.mubr.f32.vlgmr.msra.gmra.mxu1 %v1016_v15 }
 0x111   : > { %1924 = vmatpush3.msra.mxu0 %v2028_v9  ;;  %1910 = vmatprep.mubr.f32.mxu0 %v1027_v18 }
 0x112   : > { %1940 = vmatprep.mubr.f32.mxu1 %v1026_v16  ;;  %1925 = vmatprep.subr.mxu0 %v2039_v12 }
 0x113   : > { %1926 = vmatpush3.msra.mxu0 %v2039_v12 }
 0x114   : > { %1911 = vmatmul.mubr.f32.gmra.mxu0 %v1037_v27  ;;  %1941 = vmatmul.mubr.f32.gmra.mxu1 %v1036_v24 }
 0x115   : > { %1927 = vmatprep.mubr.f32.mxu0 %v1006_v2 }
 0x118   : > { %1928 = vmatmul.mubr.f32.vlgmr.msra.gmra.mxu0 %v1016_v15 }
 0x119   : > { %1930 = vmatprep.mubr.f32.mxu0 %v1026_v16 }
 0x11c   : > { %1931 = vmatmul.mubr.f32.gmra.mxu0 %v1036_v24 }
 0x152   : > { %v1839_v6 = vpop.f32.mrf.mxu1 }
 0x154   : > { %v515_v8 = vpop.f32.mrf.mxu1 }
 0x156   : > { %v1842_v10 = vpop.f32.mrf.mxu1 }
 0x158   : > { %v527_v7 = vpop.f32.mrf.mxu1 }
 0x15a   : > { %v1829_v34 = vpop.f32.mrf.mxu0  ;;  %v1859_v35 = vpop.f32.mrf.mxu1 }
 0x15b   : > { %v522_v38 = vadd.f32 %v1839_v6, %v1829_v34 }
 0x15c   : > { %v404_v36 = vpop.f32.mrf.mxu0  ;;  %v705_v9 = vpop.f32.mrf.mxu1 }
 0x15d   : > { %v516_v41 = vadd.f32 %v515_v8, %v404_v36 }
 0x15e   : > { %v1832_v37 = vpop.f32.mrf.mxu0 }
 0x15f   : > { %v1862_v39 = vpop.f32.mrf.mxu1  ;;  %v534_v43 = vadd.f32 %v1842_v10, %v1832_v37 }
 0x160   : > { %v424_v40 = vpop.f32.mrf.mxu0 }
 0x161   : > { %v721_v42 = vpop.f32.mrf.mxu1  ;;  %v528_v46 = vadd.f32 %v527_v7, %v424_v40 }
 0x162   : > { %v1849_v12 = vpop.f32.mrf.mxu0 }
 0x163   : > { %v617_v44 = vadd.f32 %v1849_v12, %v522_v38 }
 0x164   : > { %v609_v45 = vpop.f32.mrf.mxu0  ;;  %v1879_v49 = vpop.f32.mrf.mxu1 }
 0x165   : > { %v610_v47 = vadd.f32 %v609_v45, %v516_v41  ;;  %v714_v50 = vadd.f32 %v1859_v35, %v617_v44 }
 0x166   : > { %v1852_v48 = vpop.f32.mrf.mxu0  ;;  %v897_v53 = vpop.f32.mrf.mxu1 }
 0x167   : > { %v631_v51 = vadd.f32 %v1852_v48, %v534_v43  ;;  %v706_v54 = vadd.f32 %v705_v9, %v610_v47 }
 0x168   : > { %v623_v52 = vpop.f32.mrf.mxu0  ;;  %v1882_v60 = vpop.f32.mrf.mxu1 }
 0x169   : > { %v624_v55 = vadd.f32 %v623_v52, %v528_v46  ;;  %v730_v57 = vadd.f32 %v1862_v39, %v631_v51 }
 0x16a   : > { %v1869_v56 = vpop.f32.mrf.mxu0  ;;  %v909_v4 = vpop.f32.mrf.mxu1 }
 0x16b   : > { %v813_v58 = vadd.f32 %v1869_v56, %v714_v50  ;;  %v722_v61 = vadd.f32 %v721_v42, %v624_v55 }
 0x16c   : > { %v806_v59 = vpop.f32.mrf.mxu0 }
 0x16d   : > { %v904_v62 = vadd.f32 %v1879_v49, %v813_v58  ;;  %v807_v63 = vadd.f32 %v806_v59, %v706_v54 }
 0x16e   : > { %v1872_v0 = vpop.f32.mrf.mxu0 }
 0x16f   : > { %1538 = vrot.lane.b32.xlu0 %v904_v62, %s1964_s9  ;;  %v825_v1 = vadd.f32 %v1872_v0, %v730_v57  ;;  %v898_v2 = vadd.f32 %v897_v53, %v807_v63  ;;  %1529 = vst.msk [vmem:[%s248_s8 + $0x8] sm:$0xff] %vm1527_vm1, %v904_v62 }
 0x170   : > { %v818_v3 = vpop.f32.mrf.mxu0 }
 0x171   : > { %1528 = vst.msk [vmem:[%s248_s8] sm:$0xff] %vm1527_vm1, %v898_v2  ;;  %v819_v5 = vadd.f32 %v818_v3, %v722_v61  ;;  %v916_v11 = vadd.f32 %v1882_v60, %v825_v1 }
 0x173   : > { %1536 = vrot.lane.b32.xlu0 %v898_v2, %s1964_s9  ;;  %v910_v13 = vadd.f32 %v909_v4, %v819_v5  ;;  %1531 = vst.msk [vmem:[%s248_s8 + $0x18] sm:$0xff] %vm1527_vm1, %v916_v11 }
 0x175   : > { %1530 = vst.msk [vmem:[%s248_s8 + $0x10] sm:$0xff] %vm1527_vm1, %v910_v13 }
 0x177   : > { %1540 = vrot.lane.b32.xlu0 %v910_v13, %s1964_s9 }
 0x17b   : > { %1542 = vrot.lane.b32.xlu0 %v916_v11, %s1964_s9 }
 0x1c0   : > { %v1899_v14 = vpop.f32.mrf.mxu1 }
 0x1c2   : > { %v1123_v15 = vpop.f32.mrf.mxu1 }
 0x1c4   : > { %v1902_v16 = vpop.f32.mrf.mxu1 }
 0x1c6   : > { %v1135_v17 = vpop.f32.mrf.mxu1 }
 0x1c8   : > { %v1889_v18 = vpop.f32.mrf.mxu0  ;;  %v1919_v19 = vpop.f32.mrf.mxu1 }
 0x1c9   : > { %v1130_v27 = vadd.f32 %v1899_v14, %v1889_v18 }
 0x1ca   : > { %v1012_v20 = vpop.f32.mrf.mxu0  ;;  %v1313_v21 = vpop.f32.mrf.mxu1 }
 0x1cb   : > { %v1124_v29 = vadd.f32 %v1123_v15, %v1012_v20 }
 0x1cc   : > { %v1892_v22 = vpop.f32.mrf.mxu0  ;;  %v1922_v23 = vpop.f32.mrf.mxu1 }
 0x1cd   : > { %v1142_v6 = vadd.f32 %v1902_v16, %v1892_v22 }
 0x1ce   : > { %v1032_v24 = vpop.f32.mrf.mxu0  ;;  %v1329_v25 = vpop.f32.mrf.mxu1 }
 0x1cf   : > { %v1136_v10 = vadd.f32 %v1135_v17, %v1032_v24 }
 0x1d0   : > { %v1909_v26 = vpop.f32.mrf.mxu0  ;;  %v1939_v31 = vpop.f32.mrf.mxu1 }
 0x1d1   : > { %v1225_v30 = vadd.f32 %v1909_v26, %v1130_v27 }
 0x1d2   : > { %v1217_v28 = vpop.f32.mrf.mxu0  ;;  %v1505_v34 = vpop.f32.mrf.mxu1 }
 0x1d3   : > { %v1218_v33 = vadd.f32 %v1217_v28, %v1124_v29  ;;  %v1322_v7 = vadd.f32 %v1919_v19, %v1225_v30 }
 0x1d4   : > { %v1912_v32 = vpop.f32.mrf.mxu0  ;;  %v1942_v12 = vpop.f32.mrf.mxu1 }
 0x1d5   : > { %v1239_v35 = vadd.f32 %v1912_v32, %v1142_v6  ;;  %v1314_v38 = vadd.f32 %v1313_v21, %v1218_v33 }
 0x1d6   : > { %v1231_v8 = vpop.f32.mrf.mxu0  ;;  %v1517_v49 = vpop.f32.mrf.mxu1 }
 0x1d7   : > { %v1232_v9 = vadd.f32 %v1231_v8, %v1136_v10  ;;  %v1338_v42 = vadd.f32 %v1922_v23, %v1239_v35 }
 0x1d8   : > { %v1929_v36 = vpop.f32.mrf.mxu0 }
 0x1d9   : > { %v1421_v37 = vadd.f32 %v1929_v36, %v1322_v7  ;;  %v1330_v45 = vadd.f32 %v1329_v25, %v1232_v9 }
 0x1da   : > { %v1414_v39 = vpop.f32.mrf.mxu0 }
 0x1db   : > { %v1512_v40 = vadd.f32 %v1939_v31, %v1421_v37  ;;  %v1415_v41 = vadd.f32 %v1414_v39, %v1314_v38 }
 0x1dc   : > { %v1932_v43 = vpop.f32.mrf.mxu0 }
 0x1dd   : > { %v1506_v44 = vadd.f32 %v1505_v34, %v1415_v41  ;;  %1562 = vrot.lane.b32.xlu1 %v1512_v40, %s1964_s9  ;;  %v1433_v46 = vadd.f32 %v1932_v43, %v1338_v42  ;;  %1553 = vst.msk [vmem:[%s260_s12 + $0x8] sm:$0xff] %vm1527_vm1, %v1512_v40 }
 0x1de   : > { %v1426_v47 = vpop.f32.mrf.mxu0 }
 0x1df   : > { %1552 = vst.msk [vmem:[%s260_s12] sm:$0xff] %vm1527_vm1, %v1506_v44  ;;  %v1427_v48 = vadd.f32 %v1426_v47, %v1330_v45  ;;  %v1524_v52 = vadd.f32 %v1942_v12, %v1433_v46 }
 0x1e1   : > { %v1518_v50 = vadd.f32 %v1517_v49, %v1427_v48  ;;  %1560 = vrot.lane.b32.xlu1 %v1506_v44, %s1964_s9  ;;  %v1539_v51 = vpop.permute.xlu0 %1538  ;;  %1555 = vst.msk [vmem:[%s260_s12 + $0x18] sm:$0xff] %vm1527_vm1, %v1524_v52 }
 0x1e2   : > { %1549 = vst.msk [vmem:[%s254_s15 + $0x8] sm:$0xff] %vm1527_vm1, %v1539_v51 }
 0x1e3   : > { %1554 = vst.msk [vmem:[%s260_s12 + $0x10] sm:$0xff] %vm1527_vm1, %v1518_v50 }
 0x1e5   : > { %1564 = vrot.lane.b32.xlu1 %v1518_v50, %s1964_s9  ;;  %v1537_v53 = vpop.permute.xlu0 %1536 }
 0x1e6   : > { %1548 = vst.msk [vmem:[%s254_s15] sm:$0xff] %vm1527_vm1, %v1537_v53 }
 0x1e9   : > { %1566 = vrot.lane.b32.xlu1 %v1524_v52, %s1964_s9  ;;  %v1541_v54 = vpop.permute.xlu0 %1540 }
 0x1ea   : > { %1550 = vst.msk [vmem:[%s254_s15 + $0x10] sm:$0xff] %vm1527_vm1, %v1541_v54 }
 0x1ed   : > { %v1543_v55 = vpop.permute.xlu0 %1542 }
 0x1ee   : > { %1551 = vst.msk [vmem:[%s254_s15 + $0x18] sm:$0xff] %vm1527_vm1, %v1543_v55 }
 0x24f   : > { %v1563_v56 = vpop.permute.xlu1 %1562 }
 0x250   : > { %1573 = vst.msk [vmem:[%s266_s19 + $0x8] sm:$0xff] %vm1527_vm1, %v1563_v56 }
 0x253   : > { %v1561_v57 = vpop.permute.xlu1 %1560 }
 0x254   : > { %1572 = vst.msk [vmem:[%s266_s19] sm:$0xff] %vm1527_vm1, %v1561_v57 }
 0x257   : > { %v1565_v58 = vpop.permute.xlu1 %1564 }
 0x258   : > { %1574 = vst.msk [vmem:[%s266_s19 + $0x10] sm:$0xff] %vm1527_vm1, %v1565_v58 }
 0x25b   : > { %v1567_v59 = vpop.permute.xlu1 %1566 }
 0x25c   : > { %1575 = vst.msk [vmem:[%s266_s19 + $0x18] sm:$0xff] %vm1527_vm1, %v1567_v59 }
 0x25d PF: > { %s16_s18 = sadd.s32 1, %s1960_s18  }
 0x25e   : > { %p13_p4 = scmp.ge.s32.totalorder %s16_s18, 4  }
 0x260   :  { %15 = sbr.rel (!%p13_p4) target bundleno = 1 (0x1), region = 94 }

</bundles_post_ra>
